<compile_context>
chip_gen: v7x
topology: tpu7x:2x2x1
jax: 0.10.0
libtpu: 0.0.40
codegen_flags: <defaults>
</compile_context>

<pallas_src>
import functools

import jax
import jax.numpy as jnp
from jax.experimental import pallas as pl
from jax.experimental.pallas import tpu as pltpu

_LANE = 128
_MIB = 1024 * 1024


def _vmem_capacity_bytes():
    try:
        return int(pltpu.get_tpu_info().vmem_capacity_bytes)
    except Exception:
        return 64 * _MIB  # conservative (v7x per-TensorCore) fallback


# ---------------- fused single-pass kernel (per-sample slab resident) -------

def _fused_kernel(x_ref, w_ref, b_ref, o_ref, *, inv_hw):
    # x_ref/o_ref: (1, C, HW) for one sample; w_ref: (C, C) folded weights;
    # b_ref: (1, C) folded bias.  gate = clip(mean @ W'/6 + (b/6 + 0.5), 0, 1).
    xv = x_ref[...]                                             # native dtype
    mean = jnp.sum(xv, axis=2, dtype=jnp.float32) * inv_hw      # (1, C) f32
    y = jnp.dot(mean, w_ref[...],
                preferred_element_type=jnp.float32) + b_ref[...]
    gate = jnp.clip(y, 0.0, 1.0).astype(xv.dtype)               # (1, C)
    o_ref[...] = xv * gate[:, :, None]


# -------------- tiled fallback: pass 1 (mean + gate), pass 2 (scale) --------

def _mean_gate_kernel(x_ref, w_ref, b_ref, gate_ref, acc_ref, *,
                      inv_hw, hw_total, t_hw, ragged):
    # x_ref: (1, C, t_hw) spatial tile; acc_ref: (1, C) f32 scratch accumulator
    # persisting across the hw ("arbitrary") grid axis; gate_ref: (1, C, 1).
    hw_i = pl.program_id(1)

    @pl.when(hw_i == 0)
    def _init():
        acc_ref[...] = jnp.zeros_like(acc_ref)

    xv = x_ref[...]
    if ragged:
        # Mask the out-of-bounds lanes of the ragged tail tile (OOB region of
        # a partial block holds unspecified data).
        col = jax.lax.broadcasted_iota(jnp.int32, xv.shape, 2) + hw_i * t_hw
        xv = jnp.where(col < hw_total, xv, jnp.zeros_like(xv))
    acc_ref[...] += jnp.sum(xv, axis=2, dtype=jnp.float32)

    @pl.when(hw_i == pl.num_programs(1) - 1)
    def _finalize():
        mean = acc_ref[...] * inv_hw                            # (1, C) f32
        y = jnp.dot(mean, w_ref[...],
                    preferred_element_type=jnp.float32) + b_ref[...]
        gate_ref[...] = jnp.clip(y, 0.0, 1.0)[:, :, None].astype(gate_ref.dtype)


def _scale_kernel(x_ref, gate_ref, o_ref):
    # (1, C, t_hw) * (1, C, 1) broadcast in x's native dtype (lane splat only).
    o_ref[...] = x_ref[...] * gate_ref[...]


# ------------------------------- wrapper -------------------------------------

def effective_se_module(x, fc_weight, fc_bias, *, max_tile_bytes=None,
                        force_tiled=False):
    """x: (N, C, H, W); fc_weight: (C, C, 1, 1); fc_bias: (C,)."""
    N, C, H, W = x.shape
    HW = H * W
    itemsize = jnp.dtype(x.dtype).itemsize

    x_flat = x.reshape(N, C, HW)

    # Fold hardsigmoid constants into the 1x1-conv weights (kept in f32; the
    # gate matmul is tiny):  gate = clip(mean @ (W^T/6) + (b/6 + 0.5), 0, 1).
    w_p = (fc_weight[:, :, 0, 0].T / 6.0).astype(jnp.float32)    # (C_in, C_out)
    b_p = (fc_bias.reshape(1, C) / 6.0 + 0.5).astype(jnp.float32)

    vmem_cap = _vmem_capacity_bytes()
    vmem_budget = int(vmem_cap * 7 // 10)         # headroom under physical VMEM

    slab_bytes = C * HW * itemsize
    w_bytes = C * C * 4 + C * 4
    # fused footprint: double-buffered in + out slabs + weights + margin
    fused_bytes = 4 * slab_bytes + 2 * w_bytes + 2 * _MIB

    if not force_tiled and fused_bytes <= vmem_budget:
        # ---- fused single kernel: one HBM read + one HBM write of x --------
        out_flat = pl.pallas_call(
            functools.partial(_fused_kernel, inv_hw=1.0 / HW),
            out_shape=jax.ShapeDtypeStruct((N, C, HW), x.dtype),
            grid_spec=pltpu.PrefetchScalarGridSpec(
                num_scalar_prefetch=0,
                grid=(N,),
                in_specs=[pl.BlockSpec((1, C, HW), lambda n: (n, 0, 0)),
                          pl.BlockSpec((C, C), lambda n: (0, 0)),
                          pl.BlockSpec((1, C), lambda n: (0, 0))],
                out_specs=pl.BlockSpec((1, C, HW), lambda n: (n, 0, 0)),
            ),
            compiler_params=pltpu.CompilerParams(
                dimension_semantics=("parallel",),
                vmem_limit_bytes=int(min(vmem_budget,
                                         max(16 * _MIB, fused_bytes + 4 * _MIB)))),
        )(x_flat, w_p, b_p)
        return out_flat.reshape(N, C, H, W)

    # ------------------------- tiled two-pass fallback ----------------------
    # Lane-dense spatial tile; ~8 MiB target amortizes per-grid-step overhead.
    if max_tile_bytes is None:
        max_tile_bytes = int(min(8 * _MIB, vmem_budget // 6))
    bytes_per_lane = C * itemsize
    hw_ceil = int(pl.cdiv(HW, _LANE)) * _LANE
    max_lanes = max(_LANE, (max_tile_bytes // bytes_per_lane) // _LANE * _LANE)
    t_hw = int(min(max_lanes, hw_ceil))
    n_hw = int(pl.cdiv(HW, t_hw))
    ragged = (HW % t_hw) != 0

    tile_bytes = C * t_hw * itemsize
    vmem_limit = int(min(vmem_budget, max(16 * _MIB, 6 * tile_bytes)))

    # pass 1: spatial mean + FC + hardsigmoid gate (fused into the finalize).
    gate = pl.pallas_call(
        functools.partial(_mean_gate_kernel, inv_hw=1.0 / HW, hw_total=HW,
                          t_hw=t_hw, ragged=ragged),
        out_shape=jax.ShapeDtypeStruct((N, C, 1), x.dtype),
        grid_spec=pltpu.PrefetchScalarGridSpec(
            num_scalar_prefetch=0,
            grid=(N, n_hw),
            in_specs=[pl.BlockSpec((1, C, t_hw), lambda n, h: (n, 0, h)),
                      pl.BlockSpec((C, C), lambda n, h: (0, 0)),
                      pl.BlockSpec((1, C), lambda n, h: (0, 0))],
            out_specs=pl.BlockSpec((1, C, 1), lambda n, h: (n, 0, 0)),
            scratch_shapes=[pltpu.VMEM((1, C), jnp.float32)],
        ),
        compiler_params=pltpu.CompilerParams(
            dimension_semantics=("parallel", "arbitrary"),
            vmem_limit_bytes=vmem_limit),
    )(x_flat, w_p, b_p)

    # pass 2: out = x * gate.  Output is (N, C, HW) directly (no wrapper pad /
    # slice); the ragged tail block is masked by Pallas on writeback.
    out_flat = pl.pallas_call(
        _scale_kernel,
        out_shape=jax.ShapeDtypeStruct((N, C, HW), x.dtype),
        grid_spec=pltpu.PrefetchScalarGridSpec(
            num_scalar_prefetch=0,
            grid=(N, n_hw),
            in_specs=[pl.BlockSpec((1, C, t_hw), lambda n, h: (n, 0, h)),
                      pl.BlockSpec((1, C, 1), lambda n, h: (n, 0, 0))],
            out_specs=pl.BlockSpec((1, C, t_hw), lambda n, h: (n, 0, h)),
        ),
        compiler_params=pltpu.CompilerParams(
            dimension_semantics=("parallel", "parallel"),
            vmem_limit_bytes=vmem_limit),
    )(x_flat, gate)

    return out_flat.reshape(N, C, H, W)


def _reference(x, fc_weight, fc_bias):
    # pure-JAX reference matching the PyTorch forward (add_maxpool=False)
    x_se = jnp.mean(x, axis=(2, 3), keepdims=True)                  # (N,C,1,1)
    w = fc_weight[:, :, 0, 0]                                       # (C_out, C_in)
    y = jnp.einsum("oc,ncij->noij", w, x_se) + fc_bias[None, :, None, None]
    gate = jnp.clip(y / 6.0 + 0.5, 0.0, 1.0)                        # hardsigmoid
    return x * gate


if __name__ == "__main__":
    key = jax.random.PRNGKey(0)
    k_x, k_w, k_b = jax.random.split(key, 3)

    # ---- primary test: fused single-kernel path -----------------------------
    N, C, H, W = 2, 4, 16, 16
    x = jax.random.normal(k_x, (N, C, H, W), dtype=jnp.float32)
    fc_weight = jax.random.normal(k_w, (C, C, 1, 1), dtype=jnp.float32) * 0.1
    fc_bias = jax.random.normal(k_b, (C,), dtype=jnp.float32) * 0.1

    out = jax.block_until_ready(effective_se_module(x, fc_weight, fc_bias))
    ref = _reference(x, fc_weight, fc_bias)
    assert out.shape == (N, C, H, W)
    assert jnp.allclose(out, ref, atol=1e-5, rtol=1e-5), "fused path mismatch"

    # ---- secondary test: force the tiled fallback, incl. ragged tail --------
    N2, C2, H2, W2 = 1, 8, 20, 20                      # HW = 400 = 3*128 + 16
    x2 = jax.random.normal(k_x, (N2, C2, H2, W2), dtype=jnp.float32)
    fc_w2 = jax.random.normal(k_w, (C2, C2, 1, 1), dtype=jnp.float32) * 0.1
    fc_b2 = jax.random.normal(k_b, (C2,), dtype=jnp.float32) * 0.1
    out2 = jax.block_until_ready(
        effective_se_module(x2, fc_w2, fc_b2, force_tiled=True,
                            max_tile_bytes=C2 * _LANE * 4))
    ref2 = _reference(x2, fc_w2, fc_b2)
    assert out2.shape == (N2, C2, H2, W2)
    assert jnp.allclose(out2, ref2, atol=1e-5, rtol=1e-5), "tiled path mismatch"

    print("KERNEL_OK")
</pallas_src>

<mosaic_0001>
module attributes {stable_mosaic.version = 11 : i64} {
  func.func @_fused_kernel(%arg0: i32, %arg1: memref<1x4x256xf32, #tpu.memory_space<vmem>>, %arg2: memref<4x4xf32, #tpu.memory_space<vmem>>, %arg3: memref<1x4xf32, #tpu.memory_space<vmem>>, %arg4: memref<1x4x256xf32, #tpu.memory_space<vmem>>) attributes {dimension_semantics = [#tpu.dimension_semantics<parallel>], iteration_bounds = array<i64: 2>, scalar_prefetch = 0 : i64, scratch_operands = 0 : i64, tpu.core_type = #tpu.core_type<tc>, window_params = [{transform_indices = @transform_0, window_bounds = array<i64: 1, 4, 256>}, {pipeline_mode = #tpu.pipeline_mode<synchronous>, transform_indices = @transform_1, window_bounds = array<i64: 4, 4>}, {pipeline_mode = #tpu.pipeline_mode<synchronous>, transform_indices = @transform_2, window_bounds = array<i64: 1, 4>}, {transform_indices = @transform_3, window_bounds = array<i64: 1, 4, 256>}]} {
    %c0 = arith.constant 0 : index
    %c0_0 = arith.constant 0 : index
    %c0_1 = arith.constant 0 : index
    %0 = vector.load %arg1[%c0, %c0_0, %c0_1] : memref<1x4x256xf32, #tpu.memory_space<vmem>>, vector<1x4x256xf32>
    %cst = arith.constant dense<0.000000e+00> : vector<1x4xf32>
    %1 = vector.multi_reduction <add>, %0, %cst [2] : vector<1x4x256xf32> to vector<1x4xf32>
    %cst_2 = arith.constant 3.906250e-03 : f32
    %2 = vector.broadcast %cst_2 : f32 to vector<1x4xf32>
    %3 = arith.mulf %1, %2 : vector<1x4xf32>
    %c0_3 = arith.constant 0 : index
    %c0_4 = arith.constant 0 : index
    %4 = vector.load %arg2[%c0_3, %c0_4] : memref<4x4xf32, #tpu.memory_space<vmem>>, vector<4x4xf32>
    %cst_5 = arith.constant dense<0.000000e+00> : vector<1x4xf32>
    %5 = tpu.matmul %3, %4, %cst_5 {dimension_numbers = #tpu.dot_dimension_numbers<[1], [0], [0], [1], [0, 0, 1, 1], [], []>} : vector<1x4xf32>, vector<4x4xf32>, vector<1x4xf32> -> vector<1x4xf32>
    %c0_6 = arith.constant 0 : index
    %c0_7 = arith.constant 0 : index
    %6 = vector.load %arg3[%c0_6, %c0_7] : memref<1x4xf32, #tpu.memory_space<vmem>>, vector<1x4xf32>
    %7 = arith.addf %5, %6 : vector<1x4xf32>
    %cst_8 = arith.constant 0.000000e+00 : f32
    %cst_9 = arith.constant 1.000000e+00 : f32
    %8 = vector.broadcast %cst_8 : f32 to vector<1x4xf32>
    %9 = arith.maximumf %8, %7 : vector<1x4xf32>
    %10 = vector.broadcast %cst_9 : f32 to vector<1x4xf32>
    %11 = arith.minimumf %10, %9 : vector<1x4xf32>
    %12 = vector.shape_cast %11 : vector<1x4xf32> to vector<1x4x1xf32>
    %13 = vector.broadcast %12 : vector<1x4x1xf32> to vector<1x4x256xf32>
    %14 = arith.mulf %0, %13 : vector<1x4x256xf32>
    %c0_10 = arith.constant 0 : index
    %c0_11 = arith.constant 0 : index
    %c0_12 = arith.constant 0 : index
    %15 = vector.load %arg4[%c0_10, %c0_11, %c0_12] : memref<1x4x256xf32, #tpu.memory_space<vmem>>, vector<1x4x256xf32>
    tpu.vector_store %arg4[%c0_10, %c0_11, %c0_12], %14 {strides = array<i32>} : memref<1x4x256xf32, #tpu.memory_space<vmem>>, vector<1x4x256xf32>,
    return
  }
  func.func @transform_0(%arg0: i32) -> (i32, i32, i32) {
    %c0_i32 = arith.constant 0 : i32
    %c0_i32_0 = arith.constant 0 : i32
    %c0_i32_1 = arith.constant 0 : i32
    return %arg0, %c0_i32, %c0_i32_0 : i32, i32, i32
  }
  func.func @transform_1(%arg0: i32) -> (i32, i32) {
    %c0_i32 = arith.constant 0 : i32
    %c0_i32_0 = arith.constant 0 : i32
    %c0_i32_1 = arith.constant 0 : i32
    return %c0_i32, %c0_i32_0 : i32, i32
  }
  func.func @transform_2(%arg0: i32) -> (i32, i32) {
    %c0_i32 = arith.constant 0 : i32
    %c0_i32_0 = arith.constant 0 : i32
    %c0_i32_1 = arith.constant 0 : i32
    return %c0_i32, %c0_i32_0 : i32, i32
  }
  func.func @transform_3(%arg0: i32) -> (i32, i32, i32) {
    %c0_i32 = arith.constant 0 : i32
    %c0_i32_0 = arith.constant 0 : i32
    %c0_i32_1 = arith.constant 0 : i32
    return %arg0, %c0_i32, %c0_i32_0 : i32, i32, i32
  }
}

</mosaic_0001>

<bundles_post_ra>
// kernel: tpu_custom_call.1
= control target key start
LH: loop header
LB: loop body
LE: loop exit
PB: predicated region body
PF: predicated region fallthrough
CT: control target
= control target key end

     0   :  { %8 = vsyncpa [#allocation3], 0  ;;  %s863_s0 = inlined_call_operand.hbm [shape: f32[2,4,256], index: 0, kind: input, shape index: {}]   ;;  %s864_s1 = inlined_call_operand.hbm [shape: f32[4,4], index: 1, kind: input, shape index: {}]   ;;  %s865_s2 = inlined_call_operand.vmem [shape: f32[1,4], index: 2, kind: input, shape index: {}]   ;;  %s866_s3 = inlined_call_operand.hbm [shape: f32[2,4,256], index: 3, kind: output, shape index: {}]  }
   0x1   :  { %10 = vsyncpa [#allocation3 + $0x1], 0 }
   0x2   :  { %11 = vsyncpa [#allocation6], 0 }
   0x3   :  { %12 = vsyncpa [#allocation4], 0 }
   0x4   :  { %14 = vsyncpa [#allocation4 + $0x1], 0  ;;  %s655_s12 = smov 0   ;;  %s657_s13 = smov 0  }
   0x5   :  { %s659_s14 = smov 0   ;;  %s661_s15 = smov 0  }
   0x6 LB: > { %s676_s16 = sadd.s32 4294967295, %s627_s15   ;;  %s411_s17 = sadd.s32 4294967294, %s627_s15   ;;  %s627_s15 = sphi %s661_s15, %s890_s15   ;;  %s623_s14 = sphi %s659_s14, %s889_s14   ;;  %s619_s13 = sphi %s657_s13, %s888_s13   ;;  %s615_s12 = sphi %s655_s12, %s887_s12  }
   0x7   : > { %p40_p0 = scmp.ne.s32.totalorder %s619_s13, %s615_s12  ;;  %p867_p1 = scmp.eq.s32.totalorder %s676_s16, 0 }
   0x8   : > { %p112_p3 = scmp.eq.s32.totalorder %s411_s17, 1  ;;  %p412_p5 = scmp.ge.s32.totalorder %s627_s15, 1 }
   0x9   : > { %p685_p4 = por %p867_p1, %p40_p0  ;;  %p119_p7 = scmp.lt.s32.totalorder %s627_s15, 3 }
   0xa   : > { %p690_p6 = por %p112_p3, %p40_p0  ;;  %s629_s21 = smov [#allocation5]  }
   0xb   : > { %s870_s18 = scalar_select %p685_p4, 1, 0 }
   0xc   : > { %s871_s19 = scalar_select %p690_p6, 1, 0 }
   0xd   : > { %p695_p8 = pnand %p412_p5, %p119_p7  ;;  %s132_s22 = sshll.u32 %s629_s21, 4  ;;  %s133_s22 = int_to_ptr.vmem [resolvable:$true] %s132_s22 }
   0xe   : > { %s703_s23 = sadd.s32 1, %s627_s15   ;;  %s27_s27 = sadd.s32 1, %s623_s14 }
   0xf   : > { %s872_s20 = scalar_select %p695_p8, 1, 0 }
  0x10   : > { %p446_p10 = pneg %p695_p8  ;;  %s24_s25 = ssub.s32 %s627_s15, %s703_s23 }
  0x11   : > { %p713_p12 = scmp.eq.s32.totalorder %s24_s25, 0  ;;  %s499_s30 = scalar_lea.hbm %s864_s1, 64 }
  0x12   : > { %p707_p11 = pnand %p446_p10, %p867_p1  ;;  %p500_p0 = scmp.ne.s32.totalorder %s864_s1, %s499_s30 }
  0x13   : > { %s874_s26 = scalar_select %p713_p12, 1, 0 }
  0x14   : > { %p501_p3 = pneg %p707_p11  ;;  %p506_p10 = scmp.lt.u32.totalorder %s499_s30, %s864_s1 }
  0x16   : > { %p502_p5 = pnand %p501_p3, %p500_p0 }
  0x18   : > { %p503_p7 = pneg %p502_p5 }
  0x1a   : > { %p508_p9 = pnand %p506_p10, %p503_p7 }
  0x1c   : > { %511 = shalt.err (!%p508_p9)
}
  0x1d   : > { %s512_s8 = scalar_lea.vmem %s133_s22, 64  ;;  %p520_p6 = scmp.lt.s32.totalorder %s133_s22, %s133_s22 }
  0x1e   : > { %p513_p1 = scmp.ne.s32.totalorder %s133_s22, %s512_s8  ;;  %p521_p4 = scmp.lt.s32.totalorder %s512_s8, %s512_s8 }
  0x20   : > { %p515_p2 = pnand %p513_p1, %p501_p3  ;;  %p522_p8 = por %p521_p4, %p520_p6 }
  0x22   : > { %p516_p13 = pneg %p515_p2 }
  0x24   : > { %p523_p12 = pnand %p522_p8, %p516_p13 }
  0x26   : > { %526 = shalt.err (!%p523_p12)
}
  0x27   : > { %449 = dma.hbm_to_vmem [thread:$0]  (!%p707_p11), %s864_s1, 64, %s133_s22, [#allocation6]  }
  0x28   : > { %p875_p1 = scmp.ne.s32.totalorder %s874_s26, 0  ;;  %p35_p2 = scmp.eq.s32.totalorder %s627_s15, 0 }
  0x29   : > { %p876_p4 = scmp.ne.s32.totalorder %s623_s14, %s619_s13  ;;  %p877_p6 = scmp.eq.s32.totalorder %s676_s16, 1 }
  0x2a   : > { %s739_s11 = scalar_select %p875_p1, %s623_s14, %s27_s27  }
  0x2b   : > { %p747_p8 = por %p877_p6, %p876_p4  ;;  %p459_p9 = scmp.lt.s32.totalorder %s627_s15, 2 }
  0x2c   : > { %s146_s21 = sand.u32 1, %s623_s14   ;;  %p879_p12 = pmov %p876_p4 }
  0x2d   : > { %s415_s24 = sshll.u32 %s146_s21, 3  ;;  %s429_s25 = sshll.u32 %s627_s15, 7 }
  0x2e   : > { %p36_p13 = por %p35_p2, %p879_p12  ;;  %s760_s22 = scalar_lea.hbm %s863_s0, %s429_s25 }
  0x2f   : > { %s150_s26 = scalar_lea.vmem [#allocation2], %s415_s24  ;;  %s147_s4 = scalar_lea.sflag [#allocation3], %s146_s21 }
  0x30   : > { %s158_s27 = sshll.u32 %s150_s26, 4  ;;  %p762_p11 = pnand %p459_p9, %p36_p13  ;;  %s766_s27 = int_to_ptr.vmem [resolvable:$true] %s158_s27 }
  0x31   : > { %s527_s5 = scalar_lea.hbm %s760_s22, 128  ;;  %s532_s8 = scalar_lea.hbm %s863_s0, 256 }
  0x32   : > { %p528_p0 = scmp.ne.s32.totalorder %s760_s22, %s527_s5  ;;  %p529_p3 = pneg %p762_p11 }
  0x33   : > { %p533_p10 = scmp.lt.u32.totalorder %s760_s22, %s863_s0  ;;  %p534_p1 = scmp.lt.u32.totalorder %s532_s8, %s527_s5 }
  0x34   : > { %p530_p5 = pnand %p529_p3, %p528_p0  ;;  %p536_p4 = scmp.lt.u32.totalorder %s527_s5, %s760_s22 }
  0x35   : > { %p535_p2 = por %p534_p1, %p533_p10 }
  0x36   : > { %p531_p7 = pneg %p530_p5 }
  0x37   : > { %p537_p6 = por %p536_p4, %p535_p2 }
  0x39   : > { %p538_p9 = pnand %p537_p6, %p531_p7 }
  0x3b   : > { %541 = shalt.err (!%p538_p9)
}
  0x3c   : > { %s542_s21 = scalar_lea.vmem %s766_s27, 128  ;;  %s630_s24 = smov [#allocation2]  }
  0x3d   : > { %p543_p12 = scmp.ne.s32.totalorder %s766_s27, %s542_s21  ;;  %s547_s25 = sshll.u32 %s630_s24, 4  ;;  %s548_s25 = int_to_ptr.vmem [resolvable:$false] %s547_s25 }
  0x3e   : > { %s549_s28 = scalar_lea.vmem %s548_s25, 256  ;;  %p550_p5 = scmp.lt.s32.totalorder %s766_s27, %s548_s25 }
  0x3f   : > { %p545_p13 = pnand %p543_p12, %p529_p3  ;;  %p551_p10 = scmp.lt.s32.totalorder %s549_s28, %s542_s21 }
  0x41   : > { %p546_p0 = pneg %p545_p13  ;;  %p552_p1 = por %p551_p10, %p550_p5 }
  0x43   : > { %p553_p2 = pnand %p552_p1, %p546_p0 }
  0x45   : > { %556 = shalt.err (!%p553_p2)
}
  0x46   : > { %453 = dma.hbm_to_vmem [thread:$0]  (!%p762_p11), %s760_s22, 128, %s766_s27, %s147_s4  }
  0x47   : > { %p881_p7 = scmp.ne.s32.totalorder %s872_s20, 0 }
  0x48   : > { %s796_s29 = sand.u32 (!%p881_p7), 1, %s619_s13   ;;  %p882_p3 = scmp.ne.s32.totalorder (!%p881_p7), %s870_s18, 0 }
  0x49   : > { %167 = sbr.rel (%p881_p7) target bundleno = 589 (0x24d), region = 32  ;;  %s419_s26 = sshll.u32 (!%p881_p7), %s796_s29, 3 }
  0x4a   : > { %s170_s5 = scalar_lea.sflag (!%p881_p7), [#allocation3], %s796_s29  ;;  %s173_s6 = scalar_lea.vmem (!%p881_p7), [#allocation2], %s419_s26 }
  0x50   : > { %602 = dma.done.wait (%p882_p3), %s170_s5, 128  }
  0x51   : > { %604 = vsyncadd (%p882_p3), %s170_s5, 4294967168  ;;  %p883_p11 = scmp.eq.s32.totalorder %s676_s16, 0 }
  0x53   : > { %606 = dma.done.wait (%p883_p11), [#allocation6], 64   ;;  %p884_p4 = pmov %p883_p11 }
  0x54   : > { %vm204_vm0 = vcmask 1043456   ;;  %v200_v0 = vld [vmem:[%s173_s6] sm:$0xff]  ;;  %v631_v5 = vmov 0.0   ;;  %v211_v6 = vld [vmem:[#allocation5] sm:$0xf]  ;;  %vm632_vm1 = vmmov 0   ;;  %v214_v7 = vlaneseq }
  0x55   : > { %608 = vsyncadd (%p884_p4), [#allocation6], 4294967232  ;;  %v202_v1 = vcombine.high %v200_v0, %v200_v0  ;;  %v205_v2 = vsel %vm204_vm0, %v200_v0, 0.0  ;;  %433 = vmatprep.subr.mxu0 %v631_v5  ;;  %435 = vmatprep.mubr.msk.f32.mxu0 %vm632_vm1, %v631_v5  ;;  %vm220_vm2 = vcmask 31744   ;;  %v212_v14 = vld [vmem:[%s865_s2] sm:$0x1] }
  0x56   : > { %434 = vmatpush3.msk.msra.mxu0 %vm204_vm0, %v211_v6  ;;  %v215_v8 = vand.u32 127, %v214_v7  ;;  %v217_v9 = vshrl.u32 %v214_v7, 7  ;;  %v633_v22 = vmov 839922192   ;;  %s430_s22 = sshll.u32 %s676_s16, 7  ;;  %s199_s27 = scalar_lea.vmem [#allocation7], %s419_s26 }
  0x57   : > { %v206_v3 = vsel %vm204_vm0, %v202_v1, 0.0  ;;  %v307_v23 = vunpack.c.l.s4 %v633_v22  ;;  %s331_s30 = sshll.u32 %s199_s27, 4  ;;  %s819_s8 = scalar_lea.hbm %s866_s3, %s430_s22  ;;  %s821_s30 = int_to_ptr.vmem [resolvable:$true] %s331_s30 }
  0x58   : > { %v207_v4 = vadd.f32 %v206_v3, %v205_v2  ;;  %v218_v10 = vsub.s32 %v215_v8, %v217_v9  ;;  %v300_v19 = vsub.s32 0, %v217_v9  ;;  %s317_s9 = scalar_lea.sflag [#allocation4], %s796_s29  ;;  %s557_s10 = scalar_lea.vmem %s821_s30, 128 }
  0x59   : > { %v308_v24 = vunpack.c.0.s8 %v307_v23  ;;  %p558_p6 = scmp.ne.s32.totalorder %s821_s30, %s557_s10  ;;  %s634_s16 = smov [#allocation7]  }
  0x5a   : > { %208 = vadd.xlane.f32.xlu0 %v207_v4  ;;  %s561_s21 = sshll.u32 %s634_s16, 4  ;;  %s562_s21 = int_to_ptr.vmem [resolvable:$false] %s561_s21 }
  0x5b   : > { %v311_v25 = vsub.s32 %v308_v24, %v217_v9  ;;  %p559_p9 = pnand %p558_p6, %p747_p8  ;;  %s563_s24 = scalar_lea.vmem %s562_s21, 256 }
  0x5c   : > { %p564_p13 = scmp.lt.s32.totalorder %s821_s30, %s562_s21  ;;  %p565_p0 = scmp.lt.s32.totalorder %s563_s24, %s557_s10 }
  0x5d   : > { %p560_p12 = pneg %p559_p9 }
  0x5e   : > { %p566_p5 = por %p565_p0, %p564_p13 }
  0x60   : > { %p567_p10 = pnand %p566_p5, %p560_p12 }
  0xe7   : > { %v209_v11 = vpop.xlane.xlu0 %208 }
  0xe8   : > { %v210_v12 = vmul.f32 0.00390625, %v209_v11 }
  0xea   : > { %v219_v13 = vrot.slane %v210_v12, %v218_v10 }
  0xec   : > { %436 = vmatmul.mubr.msk.f32.vlgmr.msra.gmra.mrb[0].mxu0 %vm220_vm2, %v219_v13 }
 0x1bf   : > { %v292_v15 = vpop.f32.mrb[0].mxu0 }
 0x1c0   : > { %v293_v16 = vadd.f32 %v292_v15, %v212_v14  ;;  %v437_v17 = vpop.f32.mrb[1].mxu0 }
 0x1c2   : > { %v296_v18 = vmax.f32 %v293_v16, 0.0 }
 0x1c4   : > { %v297_v20 = vmin.f32 %v296_v18, 1.0 }
 0x1c6   : > { %v301_v21 = vrot.slane %v297_v20, %v300_v19 }
 0x1c8   : > { %303 = vbcast.lane.b32.xlu0 %v301_v21, 256 }
 0x23a   : > { %v304_v26 = vpop.permute.xlu0 %303 }
 0x23b   : > { %v312_v27 = vrot.slane %v304_v26, %v311_v25 }
 0x23d   : > { %v314_v28 = vmul.f32 %v312_v27, %v200_v0 }
 0x23f   : > { %315 = vst [vmem:[%s199_s27] sm:$0xff] %v314_v28 }
 0x240   : > { %570 = shalt.err (!%p567_p10)
}
 0x241   : > { %s571_s25 = scalar_lea.hbm %s819_s8, 128  ;;  %s575_s26 = scalar_lea.hbm %s866_s3, 256 }
 0x242   : > { %p572_p1 = scmp.ne.s32.totalorder %s819_s8, %s571_s25  ;;  %p576_p3 = scmp.lt.u32.totalorder %s819_s8, %s866_s3 }
 0x243   : > { %p577_p11 = scmp.lt.u32.totalorder %s575_s26, %s571_s25  ;;  %p579_p6 = scmp.lt.u32.totalorder %s571_s25, %s819_s8 }
 0x244   : > { %p573_p2 = pnand %p572_p1, %p747_p8 }
 0x245   : > { %p578_p4 = por %p577_p11, %p576_p3 }
 0x246   : > { %p574_p7 = pneg %p573_p2 }
 0x247   : > { %p580_p9 = por %p579_p6, %p578_p4 }
 0x249   : > { %p581_p12 = pnand %p580_p9, %p574_p7 }
 0x24b   : > { %584 = shalt.err (!%p581_p12)
}
 0x24c   : > { %444 = dma.vmem_to_hbm [thread:$0]  (%p747_p8), %s821_s30, 128, %s819_s8, %s317_s9  }
 0x24d PF: > { %s343_s18 = sand.u32 1, %s615_s12   ;;  %p885_p13 = scmp.ne.s32.totalorder %s871_s19, 0 }
 0x24e   : > { %p886_p0 = scmp.ge.s32.totalorder %s627_s15, 2  ;;  %s344_s20 = scalar_lea.sflag [#allocation4], %s343_s18 }
 0x250   : > { %p455_p5 = pnand %p886_p0, %p885_p13 }
 0x252   : > { %610 = dma.done.wait (!%p455_p5), %s344_s20, 128  }
 0x253   : > { %612 = vsyncadd (!%p455_p5), %s344_s20, 4294967168  ;;  %p17_p10 = scmp.ge.s32.totalorder %s703_s23, 4   ;;  %s887_s12 = smov %s619_s13 }
 0x254   : > { %s888_s13 = smov %s623_s14  ;;  %s889_s14 = smov %s739_s11 }
 0x255   : > { %s890_s15 = smov %s703_s23  ;;  %19 = sbr.rel (!%p17_p10) target bundleno = 6 (0x6), region = 81 }
 0x25c   :  { %349 = vsyncpa [#allocation3], 1 }
 0x25d   :  { %351 = vsyncpa [#allocation3 + $0x1], 1 }
 0x25e   :  { %352 = vsyncpa [#allocation6], 1 }
 0x25f   :  { %353 = vsyncpa [#allocation4], 1 }
 0x260   :  { %355 = vsyncpa [#allocation4 + $0x1], 1 }

</bundles_post_ra>
